<compile_context>
chip_gen: v7x
topology: tpu7x:2x2x1
jax: 0.10.0
libtpu: 0.0.40
codegen_flags: <defaults>
</compile_context>

<pallas_src>
import jax
import jax.numpy as jnp
from jax.experimental import pallas as pl
from jax.experimental.pallas import tpu as pltpu


# --------------------------------- kernel ------------------------------------

def classifier_kernel(x_ref, mask_ref, w_ref, b_ref, o_ref):
    x = x_ref[...]            # (tr, H)   native dtype (bf16 or f32)
    w = w_ref[...]            # (1, H)    same dtype as x (torch Linear(H,1).weight)
    # (1, H) . (tr, H) contracting over H -> (1, tr): lane-dense along rows,
    # MXU consumes x with its native last-axis contraction, f32 accumulation.
    h = jax.lax.dot_general(
        w, x, (((1,), (1,)), ((), ())), preferred_element_type=jnp.float32)
    h = h + b_ref[...]                                  # (1, 1) f32 broadcast
    mask = mask_ref[...].astype(jnp.float32)            # (1, tr) 0/1
    o_ref[...] = jax.nn.sigmoid(h) * mask               # single unmasked store


# --------------------------------- wrapper -----------------------------------

def classifier_forward(x, mask_cls, w, b, *, row_tile=1024):
    """sent_scores = sigmoid(x @ w.T + b).squeeze(-1) * mask_cls."""
    B, T, H = x.shape
    N = B * T
    dtype = x.dtype
    dbytes = jnp.dtype(dtype).itemsize

    x2 = x.reshape(N, H)                                  # no copy, no upcast
    mask2 = mask_cls.reshape(1, N).astype(jnp.bfloat16)   # 0/1 exact in bf16
    w2 = w.reshape(1, H).astype(dtype)                    # matmul in x's dtype
    b2 = b.reshape(1, 1).astype(jnp.float32)              # bias-add in f32

    # Row tile: multiple of 128, big enough to amortize ~0.35 us/grid-step,
    # small enough that the double-buffered x stream (2 x tr*H*dbytes) stays
    # well under the 32 MiB scoped VMEM budget (v7x has 64 MiB physical).
    tr = max(128, (row_tile // 128) * 128)
    while tr > 128 and tr * H * dbytes > 8 * 1024 * 1024:
        tr = max(128, ((tr // 2) // 128) * 128)
    tr = min(tr, pl.cdiv(N, 128) * 128)
    n_steps = pl.cdiv(N, tr)

    # Sub-MiB steps: request a 3-deep x buffer so back-to-back DMAs hide
    # issue gaps and keep the HBM interface busy (review: v7x small tiles).
    x_kwargs = {}
    if n_steps >= 4 and tr * H * dbytes < 2 * 1024 * 1024:
        x_kwargs["pipeline_mode"] = pl.Buffered(3)
    x_spec = pl.BlockSpec((tr, H), lambda i: (i, 0), **x_kwargs)

    flops = 2 * N * H + 3 * N
    bytes_accessed = N * H * dbytes + N * 2 + H * dbytes + 4 + N * 4

    out = pl.pallas_call(
        classifier_kernel,
        out_shape=jax.ShapeDtypeStruct((1, N), jnp.float32),
        grid=(n_steps,),
        in_specs=[
            x_spec,                                       # x rows (streamed)
            pl.BlockSpec((1, tr), lambda i: (0, i)),      # mask (bf16, lane-dense)
            pl.BlockSpec((1, H), lambda i: (0, 0)),       # weight (VMEM-resident)
            pl.BlockSpec((1, 1), lambda i: (0, 0)),       # bias   (VMEM-resident)
        ],
        out_specs=pl.BlockSpec((1, tr), lambda i: (0, i)),
        compiler_params=pltpu.CompilerParams(
            dimension_semantics=("parallel",),
            vmem_limit_bytes=32 * 1024 * 1024),
        cost_estimate=pl.CostEstimate(flops=flops,
                                      transcendentals=N,
                                      bytes_accessed=bytes_accessed),
    )(x2, mask2, w2, b2)
    return out.reshape(B, T)


# ----------------------------------- main -------------------------------------

if __name__ == "__main__":
    B, T, H = 2, 8, 32
    key = jax.random.PRNGKey(0)
    kx, kw, kb = jax.random.split(key, 3)

    # Encoder activations are typically bf16; exercise the native-dtype path.
    x = jax.random.normal(kx, (B, T, H), jnp.float32).astype(jnp.bfloat16)
    w = 0.02 * jax.random.normal(kw, (1, H), jnp.float32)   # Linear(H, 1).weight
    b = 0.02 * jax.random.normal(kb, (1,), jnp.float32)     # Linear(H, 1).bias

    # mask_cls: 1 = real sentence, 0 = padding; batch 0 has 8, batch 1 has 5.
    lengths = jnp.array([T, 5])
    mask_cls = (jnp.arange(T)[None, :] < lengths[:, None]).astype(jnp.float32)

    out = classifier_forward(x, mask_cls, w, b)
    out = jax.block_until_ready(out)

    # Pure-JAX reference (same math as the PyTorch module in eval mode), using
    # the same bf16-rounded inputs the kernel consumes.
    xf = x.astype(jnp.float32)
    wf = w.reshape(1, H).astype(jnp.bfloat16).astype(jnp.float32)
    h_ref = (xf @ wf.reshape(H, 1))[..., 0] + b[0]
    ref = jax.nn.sigmoid(h_ref) * mask_cls

    assert out.shape == (B, T)
    err = jnp.max(jnp.abs(out - ref))
    assert jnp.allclose(out, ref, atol=1e-3, rtol=1e-3), f"max abs err = {err}"
    print("KERNEL_OK")
</pallas_src>

<mosaic_0001>
module attributes {stable_mosaic.version = 11 : i64} {
  func.func @classifier_kernel(%arg0: i32, %arg1: memref<128x32xbf16, #tpu.memory_space<vmem>>, %arg2: memref<1x128xbf16, #tpu.memory_space<vmem>>, %arg3: memref<1x32xbf16, #tpu.memory_space<vmem>>, %arg4: memref<1x1xf32, #tpu.memory_space<vmem>>, %arg5: memref<1x128xf32, #tpu.memory_space<vmem>>) attributes {dimension_semantics = [#tpu.dimension_semantics<parallel>], iteration_bounds = array<i64: 1>, scalar_prefetch = 0 : i64, scratch_operands = 0 : i64, tpu.core_type = #tpu.core_type<tc>, window_params = [{transform_indices = @transform_0, window_bounds = array<i64: 128, 32>}, {transform_indices = @transform_1, window_bounds = array<i64: 1, 128>}, {pipeline_mode = #tpu.pipeline_mode<synchronous>, transform_indices = @transform_2, window_bounds = array<i64: 1, 32>}, {pipeline_mode = #tpu.pipeline_mode<synchronous>, transform_indices = @transform_3, window_bounds = array<i64: 1, 1>}, {transform_indices = @transform_4, window_bounds = array<i64: 1, 128>}]} {
    %c0 = arith.constant 0 : index
    %c0_0 = arith.constant 0 : index
    %0 = vector.load %arg1[%c0, %c0_0] : memref<128x32xbf16, #tpu.memory_space<vmem>>, vector<128x32xbf16>
    %c0_1 = arith.constant 0 : index
    %c0_2 = arith.constant 0 : index
    %1 = vector.load %arg3[%c0_1, %c0_2] : memref<1x32xbf16, #tpu.memory_space<vmem>>, vector<1x32xbf16>
    %cst = arith.constant dense<0.000000e+00> : vector<1x128xf32>
    %2 = tpu.matmul %1, %0, %cst {dimension_numbers = #tpu.dot_dimension_numbers<[1], [1], [0], [0], [0, 0, 1, 0], [], []>} : vector<1x32xbf16>, vector<128x32xbf16>, vector<1x128xf32> -> vector<1x128xf32>
    %c0_3 = arith.constant 0 : index
    %c0_4 = arith.constant 0 : index
    %3 = vector.load %arg4[%c0_3, %c0_4] : memref<1x1xf32, #tpu.memory_space<vmem>>, vector<1x1xf32>
    %4 = vector.broadcast %3 : vector<1x1xf32> to vector<1x128xf32>
    %5 = arith.addf %2, %4 : vector<1x128xf32>
    %c0_5 = arith.constant 0 : index
    %c0_6 = arith.constant 0 : index
    %6 = vector.load %arg2[%c0_5, %c0_6] : memref<1x128xbf16, #tpu.memory_space<vmem>>, vector<1x128xbf16>
    %7 = arith.extf %6 : vector<1x128xbf16> to vector<1x128xf32>
    %8 = arith.negf %5 : vector<1x128xf32>
    %9 = math.exp %8 : vector<1x128xf32>
    %cst_7 = arith.constant 1.000000e+00 : f32
    %10 = vector.broadcast %cst_7 : f32 to vector<1x128xf32>
    %11 = arith.addf %10, %9 : vector<1x128xf32>
    %12 = arith.divf %10, %11 : vector<1x128xf32>
    %13 = arith.mulf %12, %7 : vector<1x128xf32>
    %c0_8 = arith.constant 0 : index
    %c0_9 = arith.constant 0 : index
    %14 = vector.load %arg5[%c0_8, %c0_9] : memref<1x128xf32, #tpu.memory_space<vmem>>, vector<1x128xf32>
    tpu.vector_store %arg5[%c0_8, %c0_9], %13 {strides = array<i32>} : memref<1x128xf32, #tpu.memory_space<vmem>>, vector<1x128xf32>,
    return
  }
  func.func @transform_0(%arg0: i32) -> (i32, i32) {
    %c0_i32 = arith.constant 0 : i32
    %c0_i32_0 = arith.constant 0 : i32
    return %arg0, %c0_i32 : i32, i32
  }
  func.func @transform_1(%arg0: i32) -> (i32, i32) {
    %c0_i32 = arith.constant 0 : i32
    %c0_i32_0 = arith.constant 0 : i32
    return %c0_i32, %arg0 : i32, i32
  }
  func.func @transform_2(%arg0: i32) -> (i32, i32) {
    %c0_i32 = arith.constant 0 : i32
    %c0_i32_0 = arith.constant 0 : i32
    %c0_i32_1 = arith.constant 0 : i32
    return %c0_i32, %c0_i32_0 : i32, i32
  }
  func.func @transform_3(%arg0: i32) -> (i32, i32) {
    %c0_i32 = arith.constant 0 : i32
    %c0_i32_0 = arith.constant 0 : i32
    %c0_i32_1 = arith.constant 0 : i32
    return %c0_i32, %c0_i32_0 : i32, i32
  }
  func.func @transform_4(%arg0: i32) -> (i32, i32) {
    %c0_i32 = arith.constant 0 : i32
    %c0_i32_0 = arith.constant 0 : i32
    return %c0_i32, %arg0 : i32, i32
  }
}

</mosaic_0001>

<bundles_post_ra>
// kernel: tpu_custom_call.1
= control target key start
LH: loop header
LB: loop body
LE: loop exit
PB: predicated region body
PF: predicated region fallthrough
CT: control target
= control target key end

     0   :  { %s376_s0 = inlined_call_operand.hbm [shape: bf16[16,32], index: 0, kind: input, shape index: {}]   ;;  %s377_s1 = inlined_call_operand.vmem [shape: bf16[1,16], index: 1, kind: input, shape index: {}]   ;;  %s378_s2 = inlined_call_operand.vmem [shape: bf16[1,32], index: 2, kind: input, shape index: {}]   ;;  %s379_s3 = inlined_call_operand.<no memory space> [shape: f32[1,1], index: 3, kind: input, shape index: {}]   ;;  %s380_s4 = inlined_call_operand.hbm [shape: f32[1,16], index: 4, kind: output, shape index: {}]  }
   0x1   :  { %v9_v0 = vstv %s379_s3 }
   0x2   :  { %10 = vst [vmem:[#allocation2] sm:$0x1] %v9_v0 }
   0x3   :  { %11 = vsyncpa [#allocation4], 0 }
   0x4   :  { %12 = vsyncpa [#allocation5], 0 }
   0x5   :  { %17 = vsyncadd [#allocation4], 896  ;;  %s302_s17 = smov [#allocation3]   ;;  %s254_s21 = scalar_lea.hbm %s376_s0, 128 }
   0x6   :  { %s18_s18 = sshll.u32 %s302_s17, 4  ;;  %p255_p0 = scmp.ne.s32.totalorder %s376_s0, %s254_s21  ;;  %s19_s18 = int_to_ptr.vmem [resolvable:$true] %s18_s18 }
   0x7   :  { %p258_p1 = scmp.lt.u32.totalorder %s254_s21, %s376_s0 }
   0x9   :  { %p260_p2 = pnand %p258_p1, %p255_p0 }
   0xb   :  { %263 = shalt.err (!%p260_p2)
}
   0xc   :  { %s264_s3 = scalar_lea.vmem %s19_s18, 128  ;;  %s268_s26 = scalar_lea.vmem %s19_s18, 1024 }
   0xd   :  { %p265_p3 = scmp.ne.s32.totalorder %s19_s18, %s264_s3  ;;  %p269_p4 = scmp.lt.s32.totalorder %s19_s18, %s19_s18 }
   0xe   :  { %p270_p5 = scmp.lt.s32.totalorder %s268_s26, %s264_s3 }
  0x10   :  { %p271_p6 = por %p270_p5, %p269_p4 }
  0x12   :  { %p272_p7 = pnand %p271_p6, %p265_p3 }
  0x14   :  { %275 = shalt.err (!%p272_p7)
}
  0x15   :  { %s303_s27 = smov 64   ;;  %s304_s28 = smov 4  }
  0x16   :  { %24 = dma.hbm_to_vmem [thread:$0]  %s376_s0, 128, %s19_s18, [#allocation4], %s303_s27, %s303_s27, %s304_s28  }
  0x17   :  { %298 = dma.done.wait [#allocation4], 1024  }
  0x18   :  { %299 = vsyncadd [#allocation4], 4294966272  ;;  %v305_v1 = vmov 0.0   ;;  %vm306_vm0 = vmmov 0   ;;  %v307_v2 = vmov 0   ;;  %vm102_vm1 = vcmask 261120  }
  0x19   :  { %214 = vmatprep.subr.bf16.mxu0 %v305_v1  ;;  %230 = vmatprep.mubr.msk.bf16.mxu0 %vm306_vm0, %v305_v1  ;;  %v242_v3 = vld [vmem:[#allocation3] sm:$0xff]   ;;  %v243_v5 = vld [vmem:[#allocation3 + $0x8] sm:$0xff]   ;;  %v52_v7 = vld [vmem:[#allocation2] sm:$0x1]  ;;  %v58_v21 = vlaneseq }
  0x1a   :  { %241 = vset.pattern.permute.xlu0 %v307_v2  ;;  %v107_v4 = vsel %vm102_vm1, %v242_v3, 0  ;;  %v110_v6 = vsel %vm102_vm1, %v243_v5, 0  ;;  %v244_v8 = vld [vmem:[#allocation3 + $0x10] sm:$0xff]   ;;  %v245_v10 = vld [vmem:[#allocation3 + $0x18] sm:$0xff]   ;;  %v246_v12 = vld [vmem:[#allocation3 + $0x20] sm:$0xff]  }
  0x1b   :  { %215 = vmatpush3.bf16.xpose.msra.mxu0 %v107_v4  ;;  %55 = vperm.xlu0 %241, %v52_v7   ;;  %v113_v9 = vsel %vm102_vm1, %v244_v8, 0  ;;  %v116_v11 = vsel %vm102_vm1, %v245_v10, 0  ;;  %v119_v13 = vsel %vm102_vm1, %v246_v12, 0  ;;  %v247_v14 = vld [vmem:[#allocation3 + $0x28] sm:$0xff]   ;;  %v248_v16 = vld [vmem:[#allocation3 + $0x30] sm:$0xff]   ;;  %v249_v18 = vld [vmem:[#allocation3 + $0x38] sm:$0xff]  }
  0x1c   :  { %216 = vmatprep.subr.bf16.mxu0 %v305_v1  ;;  %v122_v15 = vsel %vm102_vm1, %v247_v14, 0  ;;  %v125_v17 = vsel %vm102_vm1, %v248_v16, 0  ;;  %v128_v19 = vsel %vm102_vm1, %v249_v18, 0  ;;  %v51_v20 = vld [vmem:[%s378_s2] sm:$0x1]  ;;  %v59_v22 = vshrl.u32 %v58_v21, 7 }
  0x1d   :  { %v170_v34 = vld [vmem:[%s377_s1] sm:$0x1]  ;;  %s308_s2 = smov [#allocation6]  }
  0x1e   :  { %v60_v23 = vsub.s32 0, %v59_v22  ;;  %v171_v35 = vunpack.c.l.bf16 %v170_v34  ;;  %s186_s8 = sshll.u32 %s308_s2, 4  ;;  %s187_s8 = int_to_ptr.vmem [resolvable:$true] %s186_s8 }
  0x1f   :  { %s276_s9 = scalar_lea.vmem %s187_s8, 16  ;;  %s280_s10 = scalar_lea.vmem %s187_s8, 32 }
  0x20   :  { %p277_p8 = scmp.ne.s32.totalorder %s187_s8, %s276_s9  ;;  %p281_p9 = scmp.lt.s32.totalorder %s187_s8, %s187_s8 }
  0x21   :  { %p282_p10 = scmp.lt.s32.totalorder %s280_s10, %s276_s9 }
  0x23   :  { %217 = vmatpush3.bf16.xpose.msra.mxu0 %v110_v6  ;;  %p283_p11 = por %p282_p10, %p281_p9 }
  0x24   :  { %218 = vmatprep.subr.bf16.mxu0 %v305_v1 }
  0x25   :  { %p284_p12 = pnand %p283_p11, %p277_p8 }
  0x2b   :  { %219 = vmatpush3.bf16.xpose.msra.mxu0 %v113_v9 }
  0x2c   :  { %220 = vmatprep.subr.bf16.mxu0 %v305_v1 }
  0x33   :  { %221 = vmatpush3.bf16.xpose.msra.mxu0 %v116_v11 }
  0x34   :  { %222 = vmatprep.subr.bf16.mxu0 %v305_v1 }
  0x3b   :  { %223 = vmatpush3.bf16.xpose.msra.mxu0 %v119_v13 }
  0x3c   :  { %224 = vmatprep.subr.bf16.mxu0 %v305_v1 }
  0x43   :  { %225 = vmatpush3.bf16.xpose.msra.mxu0 %v122_v15 }
  0x44   :  { %226 = vmatprep.subr.bf16.mxu0 %v305_v1 }
  0x4b   :  { %227 = vmatpush3.bf16.xpose.msra.mxu0 %v125_v17 }
  0x4c   :  { %228 = vmatprep.subr.bf16.mxu0 %v305_v1 }
  0x53   :  { %229 = vmatpush3.bf16.xpose.msra.mxu0 %v128_v19 }
  0x5a   :  { %231 = vmatmul.mubr.msk.bf16.vlgmr.msra.gmra.mrb[0].mxu0 %vm102_vm1, %v51_v20 }
  0x9a   :  { %v56_v24 = vpop.permute.xlu0 %55 }
  0x9b   :  { %v61_v25 = vrot.slane %v56_v24, %v60_v23 }
 0x12d   :  { %v164_v26 = vpop.f32.mrb[0].mxu0 }
 0x12e   :  { %v165_v27 = vadd.f32 %v164_v26, %v61_v25  ;;  %v232_v28 = vpop.f32.mrb[1].mxu0 }
 0x12f   :  { %v167_v29 = vpop.f32.mrb[2].mxu0 }
 0x130   :  { %v204_v30 = vmul.f32 -1.442695, %v165_v27  ;;  %v233_v31 = vpop.f32.mrb[3].mxu0 }
 0x132   :  { %250 = vpow2.f32 %v204_v30 }
 0x13c   :  { %v251_v32 = vpop.eup %250 }
 0x13d   :  { %v175_v33 = vadd.f32 1.0, %v251_v32 }
 0x13f   :  { %252 = vrcp.f32 %v175_v33 }
 0x149   :  { %v253_v36 = vpop.eup %252 }
 0x14a   :  { %v178_v37 = vmul.f32 %v253_v36, %v171_v35 }
 0x14c   :  { %179 = vst [vmem:[#allocation6] sm:$0x1] %v178_v37 }
 0x14d   :  { %287 = shalt.err (!%p284_p12)
}
 0x14e   :  { %s288_s13 = scalar_lea.hbm %s380_s4, 16 }
 0x14f   :  { %p289_p13 = scmp.ne.s32.totalorder %s380_s4, %s288_s13  ;;  %p292_p0 = scmp.lt.u32.totalorder %s288_s13, %s380_s4 }
 0x151   :  { %p294_p1 = pnand %p292_p0, %p289_p13 }
 0x153   :  { %297 = shalt.err (!%p294_p1)
}
 0x154   :  { %189 = dma.vmem_to_hbm [thread:$0]  %s187_s8, 16, %s380_s4, [#allocation5]  }
 0x155   :  { %300 = dma.done.wait [#allocation5], 16  }
 0x156   :  { %301 = vsyncadd [#allocation5], 4294967280 }
 0x157   :  { %193 = vsyncpa [#allocation4], 1 }
 0x158   :  { %194 = vsyncpa [#allocation5], 1 }

</bundles_post_ra>
